<compile_context>
chip_gen: v5e
topology: v5e:2x2
jax: 0.10.0
libtpu: 0.0.40
codegen_flags: <defaults>
</compile_context>

<pallas_src>
import jax
import jax.numpy as jnp
from jax.experimental import pallas as pl
from jax.experimental.pallas import tpu as pltpu


def _pick_tile(dim, candidates):
    """Largest candidate tile that divides `dim`; fall back to the full dim."""
    for c in candidates:
        if dim % c == 0:
            return c
    return dim  # full-extent block is always legal (safety net; padded away)


def _pad2d(a, row_mult, col_mult):
    """Zero-pad a 2-D array so its dims are multiples of (row_mult, col_mult)."""
    r, c = a.shape
    pr, pc = (-r) % row_mult, (-c) % col_mult
    if pr == 0 and pc == 0:
        return a
    return jnp.pad(a, ((0, pr), (0, pc)))


def _linear_kernel(x_ref, w_ref, b_ref, o_ref):
    """One (tm, tn) f32 output tile, accumulated in place over the K axis."""
    k = pl.program_id(2)

    # MXU matmul with f32 accumulation (operands are bf16).
    partial = jnp.dot(x_ref[...], w_ref[...], preferred_element_type=jnp.float32)

    @pl.when(k == 0)
    def _init():
        o_ref[...] = partial

    @pl.when(k > 0)
    def _accumulate():
        o_ref[...] += partial

    # Bias epilogue once, on the final K step (keeps the VPU add off the
    # inner MXU loop).  (1, tn) broadcasts over the (tm, tn) tile.
    @pl.when(k == pl.num_programs(2) - 1)
    def _epilogue():
        o_ref[...] += b_ref[...]


def linear_pallas(x, w, b):
    """x: [M, K] float, w: [K, N], b: [1, N] -> [M, N] f32 (f32 accumulation)."""
    M, K = x.shape
    K2, N = w.shape
    assert K == K2 and b.shape == (1, N)

    # MXU-friendly operand dtypes: bf16 inputs, f32 bias/output.
    x = x.astype(jnp.bfloat16)
    w = w.astype(jnp.bfloat16)
    b = b.astype(jnp.float32)

    # Pad to (16, 128)-aligned shapes: 16 rows = one bf16 sublane-packed vreg,
    # 128-multiple N keeps output stores unmasked, and zero-padded K only adds
    # zeros to the accumulation.
    x = _pad2d(x, 16, 128)
    w = _pad2d(w, 128, 128)
    b = _pad2d(b, 1, 128)
    Mp, Kp = x.shape
    _, Np = w.shape

    # Tile selection: largest MXU/lane-friendly divisors (descending order).
    tm = _pick_tile(Mp, (512, 256, 128, 64, 32, 16))
    tn = _pick_tile(Np, (1024, 512, 256, 128))
    tk = _pick_tile(Kp, (1024, 512, 256, 128))

    # v7x shards "parallel" grid axes across its 2 TensorCores: keep >= 2
    # (i, j) tiles when the problem allows so one core doesn't idle.
    while (Mp // tm) * (Np // tn) < 2:
        if tn >= 256:
            tn //= 2
        elif tm >= 32:
            tm //= 2
        else:
            break

    grid = (Mp // tm, Np // tn, Kp // tk)
    gi, gj, gk = grid

    # Double-buffered working set: bf16 x/w tiles, f32 bias + resident output.
    working_set = 2 * (tm * tk * 2 + tk * tn * 2 + tn * 4 + tm * tn * 4)
    # Cap at 48 MiB: ~75% of v7x's 64 MiB physical VMEM, trivially fine on
    # v5e/v6e's 128 MiB.
    vmem_limit = int(min(48 * 1024 * 1024, max(32 * 1024 * 1024, 2 * working_set)))

    # Advisory cost: count real HBM traffic (x re-read per N-tile, w re-read
    # per M-tile, bias per (i) row of tiles, output written once).
    cost = pl.CostEstimate(
        flops=2 * Mp * Np * Kp,
        transcendentals=0,
        bytes_accessed=(x.size * 2 * gj
                        + w.size * 2 * gi
                        + b.size * 4 * gi
                        + Mp * Np * 4),
    )

    out = pl.pallas_call(
        _linear_kernel,
        out_shape=jax.ShapeDtypeStruct((Mp, Np), jnp.float32),
        grid=grid,
        in_specs=[
            pl.BlockSpec((tm, tk), lambda i, j, k: (i, k)),   # x tile
            pl.BlockSpec((tk, tn), lambda i, j, k: (k, j)),   # w tile
            pl.BlockSpec((1, tn), lambda i, j, k: (0, j)),    # bias (j only)
        ],
        # Output index_map ignores k -> tile stays VMEM-resident across the
        # reduction axis; we accumulate straight into it (no scratch).
        out_specs=pl.BlockSpec((tm, tn), lambda i, j, k: (i, j)),
        compiler_params=pltpu.CompilerParams(
            dimension_semantics=("parallel", "parallel", "arbitrary"),
            vmem_limit_bytes=vmem_limit,
            # Let XLA fuse the f32->bf16 convert of x into the kernel operand
            # instead of running it as a separate HBM read+write pass.
            allow_input_fusion=[True, False, False],
        ),
        cost_estimate=cost,
    )(x, w, b)

    if (Mp, Np) != (M, N):
        out = out[:M, :N]
    return out


class BaseLinearModel:
    """Deterministic synthetic base model: y = x @ W + b (bf16 GEMM, f32 out)."""

    def __init__(self, d_in, d_out, key):
        kw, kb = jax.random.split(key)
        # Matmul operand in bf16 (full MXU rate, halved HBM traffic);
        # bias stays f32 for the f32 epilogue (v5e VPU has no bf16).
        self.w = (jax.random.normal(kw, (d_in, d_out), jnp.float32)
                  * 0.02).astype(jnp.bfloat16)
        self.b = jax.random.normal(kb, (1, d_out), jnp.float32) * 0.02

    def __call__(self, x):
        return linear_pallas(x, self.w, self.b)


class WAdversaryWrapper:
    """JAX port of the PyTorch WAdversaryWrapper."""

    def __init__(self, base_model, c=(1.0, 1.0)):
        self.base_model = base_model
        self.c = jnp.asarray(c, dtype=jnp.float32)  # nn.Parameter equivalent

    def get_constraint_multipliers(self):
        return self.c

    def __call__(self, inputs):
        # forward(): pure pass-through to the base model (c is NOT used).
        return self.base_model(inputs)


if __name__ == "__main__":
    key = jax.random.PRNGKey(0)
    k_x, k_m = jax.random.split(key)

    # Small-but-tileable shapes: after tile selection the grid is
    # (i, j, k) = (1, 2, 3) — exercises the in-place K accumulation and gives
    # the parallel (i, j) axes >= 2 tiles for v7x's two TensorCores.
    B, D_IN, D_OUT = 64, 768, 512
    x = jax.random.normal(k_x, (B, D_IN), jnp.float32)

    base_model = BaseLinearModel(D_IN, D_OUT, k_m)
    wrapper = WAdversaryWrapper(base_model, c=[1.0, 1.0])

    forward = jax.jit(wrapper.__call__)   # jit so the x bf16 cast can fuse
    y = forward(x)
    jax.block_until_ready(y)

    # Reference on the same bf16 operands with f32 accumulation.
    y_ref = (jnp.dot(x.astype(jnp.bfloat16), base_model.w,
                     preferred_element_type=jnp.float32) + base_model.b)

    assert y.shape == (B, D_OUT)
    assert y.dtype == jnp.float32
    assert jnp.allclose(y, y_ref, atol=2e-3, rtol=2e-3)
    assert wrapper.get_constraint_multipliers().shape == (2,)

    print("KERNEL_OK")
</pallas_src>

<mosaic_0001>
module attributes {stable_mosaic.version = 11 : i64} {
  func.func @_linear_kernel(%arg0: i32, %arg1: i32, %arg2: i32, %arg3: memref<64x256xbf16, #tpu.memory_space<vmem>>, %arg4: memref<256x256xbf16, #tpu.memory_space<vmem>>, %arg5: memref<1x256xf32, #tpu.memory_space<vmem>>, %arg6: memref<64x256xf32, #tpu.memory_space<vmem>>) attributes {dimension_semantics = [#tpu.dimension_semantics<parallel>, #tpu.dimension_semantics<parallel>, #tpu.dimension_semantics<arbitrary>], iteration_bounds = array<i64: 1, 2, 3>, scalar_prefetch = 0 : i64, scratch_operands = 0 : i64, tpu.core_type = #tpu.core_type<tc>, window_params = [{transform_indices = @transform_0, window_bounds = array<i64: 64, 256>}, {transform_indices = @transform_1, window_bounds = array<i64: 256, 256>}, {transform_indices = @transform_2, window_bounds = array<i64: 1, 256>}, {transform_indices = @transform_3, window_bounds = array<i64: 64, 256>}]} {
    %c0 = arith.constant 0 : index
    %c0_0 = arith.constant 0 : index
    %0 = vector.load %arg3[%c0, %c0_0] : memref<64x256xbf16, #tpu.memory_space<vmem>>, vector<64x256xbf16>
    %c0_1 = arith.constant 0 : index
    %c0_2 = arith.constant 0 : index
    %1 = vector.load %arg4[%c0_1, %c0_2] : memref<256x256xbf16, #tpu.memory_space<vmem>>, vector<256x256xbf16>
    %cst = arith.constant dense<0.000000e+00> : vector<64x256xf32>
    %2 = tpu.matmul %0, %1, %cst {dimension_numbers = #tpu.dot_dimension_numbers<[1], [0], [0], [1], [0, 0, 1, 1], [], []>} : vector<64x256xbf16>, vector<256x256xbf16>, vector<64x256xf32> -> vector<64x256xf32>
    %c0_i32 = arith.constant 0 : i32
    %3 = arith.cmpi eq, %arg2, %c0_i32 : i32
    %4 = arith.extui %3 : i1 to i32
    %c0_i32_3 = arith.constant 0 : i32
    %5 = arith.cmpi ne, %4, %c0_i32_3 : i32
    scf.if %5 {
      %c0_7 = arith.constant 0 : index
      %c0_8 = arith.constant 0 : index
      %12 = vector.load %arg6[%c0_7, %c0_8] : memref<64x256xf32, #tpu.memory_space<vmem>>, vector<64x256xf32>
      tpu.vector_store %arg6[%c0_7, %c0_8], %2 {strides = array<i32>} : memref<64x256xf32, #tpu.memory_space<vmem>>, vector<64x256xf32>,
    } else {
    }
    %c0_i32_4 = arith.constant 0 : i32
    %6 = arith.cmpi sgt, %arg2, %c0_i32_4 : i32
    %7 = arith.extui %6 : i1 to i32
    %c0_i32_5 = arith.constant 0 : i32
    %8 = arith.cmpi ne, %7, %c0_i32_5 : i32
    scf.if %8 {
      %c0_7 = arith.constant 0 : index
      %c0_8 = arith.constant 0 : index
      %12 = vector.load %arg6[%c0_7, %c0_8] : memref<64x256xf32, #tpu.memory_space<vmem>>, vector<64x256xf32>
      %13 = arith.addf %12, %2 : vector<64x256xf32>
      %c0_9 = arith.constant 0 : index
      %c0_10 = arith.constant 0 : index
      %14 = vector.load %arg6[%c0_9, %c0_10] : memref<64x256xf32, #tpu.memory_space<vmem>>, vector<64x256xf32>
      tpu.vector_store %arg6[%c0_9, %c0_10], %13 {strides = array<i32>} : memref<64x256xf32, #tpu.memory_space<vmem>>, vector<64x256xf32>,
    } else {
    }
    %c2_i32 = arith.constant 2 : i32
    %9 = arith.cmpi eq, %arg2, %c2_i32 : i32
    %10 = arith.extui %9 : i1 to i32
    %c0_i32_6 = arith.constant 0 : i32
    %11 = arith.cmpi ne, %10, %c0_i32_6 : i32
    scf.if %11 {
      %c0_7 = arith.constant 0 : index
      %c0_8 = arith.constant 0 : index
      %12 = vector.load %arg6[%c0_7, %c0_8] : memref<64x256xf32, #tpu.memory_space<vmem>>, vector<64x256xf32>
      %c0_9 = arith.constant 0 : index
      %c0_10 = arith.constant 0 : index
      %13 = vector.load %arg5[%c0_9, %c0_10] : memref<1x256xf32, #tpu.memory_space<vmem>>, vector<1x256xf32>
      %14 = vector.broadcast %13 : vector<1x256xf32> to vector<64x256xf32>
      %15 = arith.addf %12, %14 : vector<64x256xf32>
      %c0_11 = arith.constant 0 : index
      %c0_12 = arith.constant 0 : index
      %16 = vector.load %arg6[%c0_11, %c0_12] : memref<64x256xf32, #tpu.memory_space<vmem>>, vector<64x256xf32>
      tpu.vector_store %arg6[%c0_11, %c0_12], %15 {strides = array<i32>} : memref<64x256xf32, #tpu.memory_space<vmem>>, vector<64x256xf32>,
    } else {
    }
    return
  }
  func.func @transform_0(%arg0: i32, %arg1: i32, %arg2: i32) -> (i32, i32) {
    %c0_i32 = arith.constant 0 : i32
    return %arg0, %arg2 : i32, i32
  }
  func.func @transform_1(%arg0: i32, %arg1: i32, %arg2: i32) -> (i32, i32) {
    %c0_i32 = arith.constant 0 : i32
    return %arg2, %arg1 : i32, i32
  }
  func.func @transform_2(%arg0: i32, %arg1: i32, %arg2: i32) -> (i32, i32) {
    %c0_i32 = arith.constant 0 : i32
    %c0_i32_0 = arith.constant 0 : i32
    return %c0_i32, %arg1 : i32, i32
  }
  func.func @transform_3(%arg0: i32, %arg1: i32, %arg2: i32) -> (i32, i32) {
    %c0_i32 = arith.constant 0 : i32
    return %arg0, %arg1 : i32, i32
  }
}

</mosaic_0001>

<bundles_post_ra>
// kernel: a_call__.2
= control target key start
LH: loop header
LB: loop body
LE: loop exit
PB: predicated region body
PF: predicated region fallthrough
CT: control target
= control target key end

     0   :  { %s2355_s0 = inlined_call_operand.hbm [shape: bf16[768,512], index: 0, kind: input, shape index: {}]   ;;  %s2356_s1 = inlined_call_operand.hbm [shape: f32[1,512], index: 1, kind: input, shape index: {}]   ;;  %s2357_s2 = inlined_call_operand.hbm [shape: f32[64,768], index: 2, kind: input, shape index: {}]   ;;  %s2358_s3 = inlined_call_operand.hbm [shape: f32[64,512], index: 3, kind: output, shape index: {}]  }
   0x1   :  { %2368 = sst [smem:[#allocation22_spill]] %s2355_s0 }
   0x2   :  { %2369 = sst [smem:[#allocation23_spill]] %s2357_s2 }
   0x3   :  { %2370 = sst [smem:[#allocation24_spill]] %s2358_s3 }
   0x4   :  { %8 = vsyncpa [#allocation3], 0 }
   0x5   :  { %10 = vsyncpa [#allocation3 + $0x1], 0 }
   0x6   :  { %11 = vsyncpa [#allocation6], 0 }
   0x7   :  { %13 = vsyncpa [#allocation6 + $0x1], 0 }
   0x8   :  { %14 = vsyncpa [#allocation4], 0 }
   0x9   :  { %16 = vsyncpa [#allocation4 + $0x1], 0  ;;  %s1812_s12 = smov 0   ;;  %s1814_s13 = smov 0  }
   0xa   :  { %s1816_s14 = smov 0   ;;  %s1818_s15 = smov 0  }
   0xb   :  { %s1820_s16 = smov 0   ;;  %s1822_s17 = smov 0  }
   0xc   :  { %s1824_s18 = smov 0   ;;  %s1826_s19 = smov 0  }
   0xd   :  { %s1828_s20 = smov 0   ;;  %s1830_s21 = smov 0  }
   0xe   :  { %s1832_s22 = smov 0   ;;  %s1834_s23 = smov 0  }
   0xf   :  { %s1836_s24 = smov 0   ;;  %s1838_s25 = smov 0  }
  0x10 LB: > { %2371 = sst [smem:[#allocation14_spill]] %s1750_s17  ;;  %s34_s26 = sadd.s32 1, %s1774_s23  ;;  %s1782_s25 = sphi %s1838_s25, %s22_s25   ;;  %s1778_s24 = sphi %s1836_s24, %s2401_s24   ;;  %s1774_s23 = sphi %s1834_s23, %s2400_s23   ;;  %s1770_s22 = sphi %s1832_s22, %s2399_s22   ;;  %s1766_s21 = sphi %s1830_s21, %s2411_s21   ;;  %s1762_s20 = sphi %s1828_s20, %s2397_s20   ;;  %s1758_s19 = sphi %s1826_s19, %s2410_s19   ;;  %s1754_s18 = sphi %s1824_s18, %s2409_s18   ;;  %s1750_s17 = sphi %s1822_s17, %s2408_s17   ;;  %s1746_s16 = sphi %s1820_s16, %s2407_s16   ;;  %s1742_s15 = sphi %s1818_s15, %s2406_s15   ;;  %s1738_s14 = sphi %s1816_s14, %s2405_s14   ;;  %s1734_s13 = sphi %s1814_s13, %s2404_s13   ;;  %s1730_s12 = sphi %s1812_s12, %s2403_s12  }
  0x11   : > { %2372 = sst [smem:[#allocation15_spill]] %s1762_s20  ;;  %s37_s27 = sadd.s32 1, %s1778_s24 }
  0x12   : > { %2373 = sst [smem:[#allocation16_spill]] %s1774_s23  ;;  %p35_p0 = scmp.ge.s32.totalorder %s34_s26, 3 }
  0x13   : > { %2374 = sst [smem:[#allocation17_spill]] %s1778_s24  ;;  %p58_p1 = scmp.eq.s32.totalorder %s1782_s25, 0 }
  0x14   : > { %p85_p2 = scmp.ne.s32.totalorder %s1750_s17, %s1746_s16  ;;  %s2413_s26 = smov (%p35_p0, %s34_s26), 0 }
  0x15   : > { %2375 = sst [smem:[#allocation18_spill]] %s2413_s26  ;;  %s2415_s27 = smov (!%p35_p0, %s37_s27), %s1778_s24 }
  0x16   : > { %s1895_s29 = ssub.s32 %s1774_s23, %s2413_s26  ;;  %p1899_p3 = por %p85_p2, %p58_p1 }
  0x17   : > { %p39_p4 = scmp.ge.s32.totalorder %s2415_s27, 2  ;;  %p48_p5 = scmp.eq.s32.totalorder %s1895_s29, 0 }
  0x18   : > { %p91_p6 = scmp.ne.s32.totalorder %s1746_s16, %s1742_s15  ;;  %p1416_p7 = scmp.lt.s32.totalorder %s1782_s25, 6 }
  0x19   : > { %s194_s4 = sand.u32 1, %s1782_s25   ;;  %s196_s5 = sand.u32 1, %s1750_s17  }
  0x1a   : > { %s1116_s6 = sshll.u32 %s196_s5, 8  ;;  %s2360_s7 = sshll.u32 %s1778_s24, 1 }
  0x1b   : > { %s1312_s8 = sshll.u32 %s1774_s23, 7  ;;  %s198_s9 = scalar_lea.vmem [#allocation5], %s1116_s6 }
  0x1c   : > { %s209_s10 = sshll.u32 %s198_s9, 4  ;;  %s204_s11 = sadd.s32 %s1312_s8, %s2360_s7  ;;  %s210_s10 = int_to_ptr.vmem [resolvable:$true] %s209_s10 }
  0x1d   : > { %s1120_s28 = sshll.u32 %s204_s11, 2  ;;  %p1406_p8 = pnand %p1416_p7, %p1899_p3 }
  0x1e   : > { %s2377_s0 = sld [smem:[#allocation22_spill]]  ;;  %s1921_s8 = scalar_lea.sflag [#allocation6], %s194_s4 }
  0x1f   : > { %s2362_s7 = smov 256   ;;  %s1785_s3 = smov 128  }
  0x20   : > { %s1786_s11 = smov 8   ;;  %p1123_p9 = scmp.ge.s32.totalorder %s1782_s25, 1 }
  0x21   : > { %p236_p10 = scmp.lt.s32.totalorder %s1782_s25, 7  ;;  %s50_s26 = sadd.s32 1, %s1762_s20 }
  0x22   : > { %p57_p12 = scmp.ne.s32.totalorder %s1762_s20, %s1758_s19  ;;  %p63_p13 = scmp.ne.s32.totalorder %s1758_s19, %s1754_s18 }
  0x23   : > { %p1927_p11 = pnand %p1123_p9, %p236_p10  ;;  %s169_s4 = sand.u32 1, %s1762_s20  }
  0x24   : > { %s206_s6 = scalar_lea.hbm %s2377_s0, %s1120_s28  ;;  %s1311_s5 = sshll.u32 %s1774_s23, 4 }
  0x25   : > { %s207_s9 = sshll.u32 %s206_s6, 4  ;;  %p59_p0 = por %p58_p1, %p57_p12  ;;  %s208_s9 = int_to_ptr.hbm [resolvable:$true] %s207_s9 }
  0x26   : > { %1408 = dma.hbm_to_vmem [thread:$0]  (!%p1406_p8), %s208_s9, 4096, %s210_s10, %s1921_s8, %s2362_s7, %s1785_s3, %s1786_s11  }
  0x27   : > { %s1935_s28 = scalar_select %p48_p5, %s1762_s20, %s50_s26  }
  0x28   : > { %s1113_s3 = sshll.u32 %s169_s4, 7  ;;  %s2380_s2 = sld [smem:[#allocation23_spill]] }
  0x29   : > { %2379 = sst [smem:[#allocation19_spill]] %s1935_s28  ;;  %s173_s26 = scalar_lea.vmem [#allocation2], %s1113_s3 }
  0x2a   : > { %s184_s7 = sshll.u32 %s173_s26, 4  ;;  %p1403_p2 = pnand %p1416_p7, %p59_p0  ;;  %s185_s7 = int_to_ptr.vmem [resolvable:$true] %s184_s7 }
  0x2b   : > { %s170_s0 = scalar_lea.sflag [#allocation3], %s169_s4  ;;  %s1787_s10 = smov 768  }
  0x2c   : > { %s2381_s6 = smov 256   ;;  %s1110_s3 = sadd.s32 4294967294, %s1782_s25  }
  0x2d   : > { %s2417_s27 = smov (%p39_p4, %s2415_s27), 0  ;;  %p111_p10 = scmp.ne.s32.totalorder %s1738_s14, %s1734_s13 }
  0x2e   : > { %s181_s9 = scalar_lea.hbm %s2380_s2, %s1311_s5  ;;  %s1788_s5 = smov 16  }
  0x2f   : > { %s182_s11 = sshll.u32 %s181_s9, 4  ;;  %s1952_s9 = sadd.s32 4294967295, %s1782_s25   ;;  %s183_s11 = int_to_ptr.hbm [resolvable:$true] %s182_s11 }
  0x30   : > { %1405 = dma.hbm_to_vmem [thread:$0]  (!%p1403_p2), %s183_s11, 2048, %s185_s7, %s170_s0, %s1787_s10, %s2381_s6, %s1788_s5  }
  0x31   : > { %p64_p3 = scmp.eq.s32.totalorder %s1952_s9, 0  ;;  %2382 = sst [smem:[#allocation20_spill]] %s2417_s27 }
  0x32   : > { %s74_s4 = ssub.s32 %s1778_s24, %s2417_s27  ;;  %s104_s11 = sadd.s32 1, %s1738_s14 }
  0x33   : > { %p1966_p5 = por %p64_p3, %p63_p13  ;;  %p1975_p8 = por %p91_p6, %p64_p3 }
  0x34   : > { %s75_s26 = sor.u32 %s74_s4, %s1895_s29  ;;  %p102_p4 = scmp.eq.s32.totalorder %s74_s4, 0 }
  0x35   : > { %p76_p9 = scmp.eq.s32.totalorder %s75_s26, 0  ;;  %s2385_s10 = sadd.s32 1, %s1750_s17 }
  0x36   : > { %s1986_s18 = scalar_select %p102_p4, %s1738_s14, %s104_s11  }
  0x37   : > { %s1991_s5 = scalar_select %p76_p9, %s1750_s17, %s2385_s10  }
  0x38   : > { %p1995_p12 = por %p111_p10, %p58_p1  ;;  %p117_p6 = scmp.ne.s32.totalorder %s1734_s13, %s1730_s12 }
  0x39   : > { %2386 = sst [smem:[#allocation21_spill]] %s1991_s5  ;;  %p143_p13 = scmp.eq.s32.totalorder %s1952_s9, 5 }
  0x3a   : > { %p149_p0 = scmp.eq.s32.totalorder %s1110_s3, 5  ;;  %p2004_p2 = por %p117_p6, %p64_p3 }
  0x3b   : > { %s221_s6 = sand.u32 1, %s1738_s14   ;;  %p2009_p4 = por %p143_p13, %p111_p10 }
  0x3c   : > { %p2013_p9 = por %p149_p0, %p117_p6  ;;  %s1121_s26 = sshll.u32 %s221_s6, 1 }
  0x3d   : > { %s2391_s10 = sshll.u32 %s1778_s24, 1  ;;  %s223_s28 = scalar_lea.vmem [#allocation7], %s1121_s26 }
  0x3e   : > { %s227_s3 = scalar_lea.hbm %s2356_s1, %s2391_s10  ;;  %s231_s20 = sshll.u32 %s223_s28, 4  ;;  %s232_s20 = int_to_ptr.vmem [resolvable:$true] %s231_s20 }
  0x3f   : > { %s229_s23 = sshll.u32 %s227_s3, 4  ;;  %p1409_p1 = pnand %p1416_p7, %p1995_p12  ;;  %s230_s23 = int_to_ptr.hbm [resolvable:$true] %s229_s23 }
  0x40   : > { %240 = sbr.rel (%p1927_p11) target bundleno = 400 (0x190), region = 32 }
  0x41   : > { %1411 = dma.hbm_to_vmem [thread:$0]  (!%p1409_p1), %s230_s23, 32, %s232_s20, %s1921_s8  }
  0x45   : > { %s242_s6 = sand.u32 1, %s1758_s19  }
  0x46   : > { %s1124_s24 = sshll.u32 %s242_s6, 7  ;;  %s243_s5 = scalar_lea.sflag [#allocation3], %s242_s6 }
  0x47   : > { %s2030_s17 = scalar_lea.vmem [#allocation2], %s1124_s24 }
  0x48   : > { %1713 = dma.done.wait (%p1966_p5), %s243_s5, 2048  }
  0x49   : > { %1715 = vsyncadd (%p1966_p5), %s243_s5, 4294965248  ;;  %s252_s2 = sand.u32 1, %s1952_s9   ;;  %s254_s20 = sand.u32 1, %s1746_s16  }
  0x4a   : > { %s1125_s23 = sshll.u32 %s254_s20, 8  ;;  %s253_s27 = scalar_lea.sflag [#allocation6], %s252_s2 }
  0x4b   : > { %s2038_s8 = scalar_lea.vmem [#allocation5], %s1125_s23 }
  0x4c   : > { %1717 = dma.done.wait (%p1975_p8), %s253_s27, 4096  }
  0x4d   : > { %1719 = vsyncadd (%p1975_p8), %s253_s27, 4294963200  ;;  %s2045_s24 = sand.u32 1, %s1734_s13  }
  0x4e   : > { %s1126_s30 = sshll.u32 %s2045_s24, 1 }
  0x4f   : > { %s2048_s28 = scalar_lea.vmem [#allocation7], %s1126_s30 }
  0x50   : > { %1721 = dma.done.wait (%p2004_p2), %s253_s27, 32  }
  0x51   : > { %1723 = vsyncadd (%p2004_p2), %s253_s27, 4294967264  ;;  %s1127_s9 = sshll.u32 %s2045_s24, 7  ;;  %v1233_v0 = vld [vmem:[%s2038_s8 + $0x70] sm:$0xf]  ;;  %v1336_v1 = vld [vmem:[%s2038_s8 + $0x74] sm:$0xf0] }
  0x52   : > { %v1297_v2 = vld [vmem:[%s2038_s8 + $0xf0] sm:$0xf]  ;;  %v1234_v3 = vor.u32 %v1336_v1, %v1233_v0  ;;  %v1352_v4 = vld [vmem:[%s2038_s8 + $0xf4] sm:$0xf0]  ;;  %v1335_v5 = vld [vmem:[%s2038_s8 + $0x74] sm:$0xf] }
  0x53   : > { %v1235_v6 = vld [vmem:[%s2038_s8 + $0x78] sm:$0xf0]  ;;  %v1298_v7 = vor.u32 %v1352_v4, %v1297_v2  ;;  %v1351_v9 = vld [vmem:[%s2038_s8 + $0xf4] sm:$0xf]  ;;  %v1225_v11 = vld [vmem:[%s2038_s8 + $0x60] sm:$0xf] }
  0x54   : > { %v1238_v8 = vor.u32 %v1335_v5, %v1235_v6  ;;  %v1299_v10 = vld [vmem:[%s2038_s8 + $0xf8] sm:$0xf0]  ;;  %705 = vmatpush.bf16.msra.mxu0 %v1234_v3  ;;  %v1334_v13 = vld [vmem:[%s2038_s8 + $0x64] sm:$0xf0]  ;;  %v1289_v14 = vld [vmem:[%s2038_s8 + $0xe0] sm:$0xf] }
  0x55   : > { %v1302_v12 = vor.u32 %v1351_v9, %v1299_v10  ;;  %v1350_v15 = vld [vmem:[%s2038_s8 + $0xe4] sm:$0xf0]  ;;  %734 = vmatpush.bf16.msra.mxu1 %v1298_v7  ;;  %v1226_v16 = vor.u32 %v1334_v13, %v1225_v11  ;;  %v1333_v18 = vld [vmem:[%s2038_s8 + $0x64] sm:$0xf]  ;;  %v1227_v19 = vld [vmem:[%s2038_s8 + $0x68] sm:$0xf0] }
  0x56   : > { %763 = vmatpush.bf16.msra.mxu2 %v1238_v8  ;;  %v1290_v17 = vor.u32 %v1350_v15, %v1289_v14  ;;  %v1349_v20 = vld [vmem:[%s2038_s8 + $0xe4] sm:$0xf]  ;;  %v1230_v21 = vor.u32 %v1333_v18, %v1227_v19  ;;  %v1291_v22 = vld [vmem:[%s2038_s8 + $0xe8] sm:$0xf0]  ;;  %v1217_v23 = vld [vmem:[%s2038_s8 + $0x50] sm:$0xf] }
  0x57   : > { %792 = vmatpush.bf16.msra.mxu3 %v1302_v12  ;;  %v1332_v24 = vld [vmem:[%s2038_s8 + $0x54] sm:$0xf0]  ;;  %v1294_v25 = vor.u32 %v1349_v20, %v1291_v22  ;;  %v1281_v26 = vld [vmem:[%s2038_s8 + $0xd0] sm:$0xf]  ;;  %v1331_v28 = vld [vmem:[%s2038_s8 + $0x54] sm:$0xf] }
  0x58   : > { %v1348_v27 = vld [vmem:[%s2038_s8 + $0xd4] sm:$0xf0]  ;;  %706 = vmatpush.bf16.msra.mxu0 %v1226_v16  ;;  %v1218_v29 = vor.u32 %v1332_v24, %v1217_v23  ;;  %v1219_v30 = vld [vmem:[%s2038_s8 + $0x58] sm:$0xf0]  ;;  %v1347_v31 = vld [vmem:[%s2038_s8 + $0xd4] sm:$0xf] }
  0x59   : > { %v1283_v32 = vld [vmem:[%s2038_s8 + $0xd8] sm:$0xf0]  ;;  %735 = vmatpush.bf16.msra.mxu1 %v1290_v17  ;;  %v1282_v33 = vor.u32 %v1348_v27, %v1281_v26  ;;  %v1222_v34 = vor.u32 %v1331_v28, %v1219_v30  ;;  %v1209_v35 = vld [vmem:[%s2038_s8 + $0x40] sm:$0xf]  ;;  %v1330_v36 = vld [vmem:[%s2038_s8 + $0x44] sm:$0xf0] }
  0x5a   : > { %764 = vmatpush.bf16.msra.mxu2 %v1230_v21  ;;  %v1273_v37 = vld [vmem:[%s2038_s8 + $0xc0] sm:$0xf]  ;;  %v1286_v38 = vor.u32 %v1347_v31, %v1283_v32  ;;  %v1346_v39 = vld [vmem:[%s2038_s8 + $0xc4] sm:$0xf0]  ;;  %v1329_v40 = vld [vmem:[%s2038_s8 + $0x44] sm:$0xf]  ;;  %v1210_v44 = vor.u32 %v1330_v36, %v1209_v35 }
  0x5b   : > { %793 = vmatpush.bf16.msra.mxu3 %v1294_v25  ;;  %v1211_v41 = vld [vmem:[%s2038_s8 + $0x48] sm:$0xf0]  ;;  %v1345_v42 = vld [vmem:[%s2038_s8 + $0xc4] sm:$0xf]  ;;  %v1274_v45 = vor.u32 %v1346_v39, %v1273_v37  ;;  %v1201_v47 = vld [vmem:[%s2038_s8 + $0x30] sm:$0xf] }
  0x5c   : > { %v1275_v43 = vld [vmem:[%s2038_s8 + $0xc8] sm:$0xf0]  ;;  %707 = vmatpush.bf16.msra.mxu0 %v1218_v29  ;;  %v1214_v46 = vor.u32 %v1329_v40, %v1211_v41  ;;  %v1328_v48 = vld [vmem:[%s2038_s8 + $0x34] sm:$0xf0]  ;;  %v1265_v49 = vld [vmem:[%s2038_s8 + $0xb0] sm:$0xf] }
  0x5d   : > { %736 = vmatpush.bf16.msra.mxu1 %v1282_v33  ;;  %v1278_v50 = vor.u32 %v1345_v42, %v1275_v43  ;;  %v1344_v51 = vld [vmem:[%s2038_s8 + $0xb4] sm:$0xf0]  ;;  %v1327_v52 = vld [vmem:[%s2038_s8 + $0x34] sm:$0xf]  ;;  %v1203_v53 = vld [vmem:[%s2038_s8 + $0x38] sm:$0xf0]  ;;  %v1202_v56 = vor.u32 %v1328_v48, %v1201_v47 }
  0x5e   : > { %765 = vmatpush.bf16.msra.mxu2 %v1222_v34  ;;  %v1343_v54 = vld [vmem:[%s2038_s8 + $0xb4] sm:$0xf]  ;;  %v1267_v55 = vld [vmem:[%s2038_s8 + $0xb8] sm:$0xf0]  ;;  %v1266_v57 = vor.u32 %v1344_v51, %v1265_v49  ;;  %v1206_v58 = vor.u32 %v1327_v52, %v1203_v53  ;;  %v1193_v59 = vld [vmem:[%s2038_s8 + $0x20] sm:$0xf] }
  0x5f   : > { %794 = vmatpush.bf16.msra.mxu3 %v1286_v38  ;;  %v1326_v60 = vld [vmem:[%s2038_s8 + $0x24] sm:$0xf0]  ;;  %v1257_v61 = vld [vmem:[%s2038_s8 + $0xa0] sm:$0xf]  ;;  %v1270_v62 = vor.u32 %v1343_v54, %v1267_v55  ;;  %v1325_v0 = vld [vmem:[%s2038_s8 + $0x24] sm:$0xf] }
  0x60   : > { %708 = vmatpush.bf16.msra.mxu0 %v1210_v44  ;;  %v1342_v63 = vld [vmem:[%s2038_s8 + $0xa4] sm:$0xf0]  ;;  %v1195_v1 = vld [vmem:[%s2038_s8 + $0x28] sm:$0xf0]  ;;  %v1341_v2 = vld [vmem:[%s2038_s8 + $0xa4] sm:$0xf]  ;;  %v1194_v5 = vor.u32 %v1326_v60, %v1193_v59 }
  0x61   : > { %737 = vmatpush.bf16.msra.mxu1 %v1274_v45  ;;  %v1259_v3 = vld [vmem:[%s2038_s8 + $0xa8] sm:$0xf0]  ;;  %v1185_v4 = vld [vmem:[%s2038_s8 + $0x10] sm:$0xf]  ;;  %v1324_v6 = vld [vmem:[%s2038_s8 + $0x14] sm:$0xf0]  ;;  %v1258_v9 = vor.u32 %v1342_v63, %v1257_v61  ;;  %v1198_v10 = vor.u32 %v1325_v0, %v1195_v1 }
  0x62   : > { %766 = vmatpush.bf16.msra.mxu2 %v1214_v46  ;;  %v1249_v7 = vld [vmem:[%s2038_s8 + $0x90] sm:$0xf]  ;;  %v1340_v8 = vld [vmem:[%s2038_s8 + $0x94] sm:$0xf0]  ;;  %v1323_v11 = vld [vmem:[%s2038_s8 + $0x14] sm:$0xf]  ;;  %v1262_v14 = vor.u32 %v1341_v2, %v1259_v3  ;;  %v1186_v24 = vor.u32 %v1324_v6, %v1185_v4 }
  0x63   : > { %795 = vmatpush.bf16.msra.mxu3 %v1278_v50  ;;  %v1187_v12 = vld [vmem:[%s2038_s8 + $0x18] sm:$0xf0]  ;;  %v1339_v13 = vld [vmem:[%s2038_s8 + $0x94] sm:$0xf]  ;;  %v307_v16 = vld [vmem:[%s2030_s17] sm:$0xff]  ;;  %v1250_v25 = vor.u32 %v1340_v8, %v1249_v7  ;;  %p1303_p7 = scmp.ne.s32.totalorder %s1766_s21, 0 }
  0x64   : > { %709 = vmatpush.bf16.msra.mxu0 %v1202_v56  ;;  %v1251_v15 = vld [vmem:[%s2038_s8 + $0x98] sm:$0xf0]  ;;  %v1128_v17 = vld [vmem:[%s2030_s17 + $0x8] sm:$0xff]  ;;  %v1177_v18 = vld [vmem:[%s2038_s8] sm:$0xf]  ;;  %v1190_v32 = vor.u32 %v1323_v11, %v1187_v12 }
  0x65   : > { %738 = vmatpush.bf16.msra.mxu1 %v1266_v57  ;;  %v1322_v19 = vld [vmem:[%s2038_s8 + $0x4] sm:$0xf0]  ;;  %v1357_v20 = vpack.c.bf16 %v1128_v17, %v307_v16  ;;  %v1129_v21 = vld [vmem:[%s2030_s17 + $0x10] sm:$0xff]  ;;  %v1130_v22 = vld [vmem:[%s2030_s17 + $0x18] sm:$0xff]  ;;  %v1254_v38 = vor.u32 %v1339_v13, %v1251_v15 }
  0x66   : > { %767 = vmatpush.bf16.msra.mxu2 %v1206_v58  ;;  %v1131_v23 = vld [vmem:[%s2030_s17 + $0x20] sm:$0xff]  ;;  %v1338_v27 = vld [vmem:[%s2038_s8 + $0x84] sm:$0xf0]  ;;  %v1362_v28 = vpack.c.bf16 %v1130_v22, %v1129_v21  ;;  %v1133_v30 = vld [vmem:[%s2030_s17 + $0x30] sm:$0xff]  ;;  %v1178_v46 = vor.u32 %v1322_v19, %v1177_v18 }
  0x67   : > { %796 = vmatpush.bf16.msra.mxu3 %v1270_v62  ;;  %v1241_v26 = vld [vmem:[%s2038_s8 + $0x80] sm:$0xf]  ;;  %v1132_v29 = vld [vmem:[%s2030_s17 + $0x28] sm:$0xff]  ;;  %v1134_v31 = vld [vmem:[%s2030_s17 + $0x38] sm:$0xff]  ;;  %1358 = vst [vmem:[#allocation9] sm:$0xff] %v1357_v20  }
  0x68   : > { %710 = vmatpush.bf16.msra.mxu0 %v1194_v5  ;;  %v1367_v33 = vpack.c.bf16 %v1132_v29, %v1131_v23  ;;  %v1372_v34 = vpack.c.bf16 %v1134_v31, %v1133_v30  ;;  %v1135_v35 = vld [vmem:[%s2030_s17 + $0x40] sm:$0xff]  ;;  %v1136_v36 = vld [vmem:[%s2030_s17 + $0x48] sm:$0xff]  ;;  %v1137_v37 = vld [vmem:[%s2030_s17 + $0x50] sm:$0xff]  ;;  %1363 = vst [vmem:[#allocation9 + $0x8] sm:$0xff] %v1362_v28   ;;  %v1242_v47 = vor.u32 %v1338_v27, %v1241_v26 }
  0x69   : > { %739 = vmatpush.bf16.msra.mxu1 %v1258_v9  ;;  %v1321_v39 = vld [vmem:[%s2038_s8 + $0x4] sm:$0xf]  ;;  %v1179_v40 = vld [vmem:[%s2038_s8 + $0x8] sm:$0xf0]  ;;  %v1377_v41 = vpack.c.bf16 %v1136_v36, %v1135_v35  ;;  %v1138_v42 = vld [vmem:[%s2030_s17 + $0x58] sm:$0xff] }
  0x6a   : > { %768 = vmatpush.bf16.msra.mxu2 %v1198_v10  ;;  %v1337_v43 = vld [vmem:[%s2038_s8 + $0x84] sm:$0xf]  ;;  %v1243_v44 = vld [vmem:[%s2038_s8 + $0x88] sm:$0xf0]  ;;  %1368 = vst [vmem:[#allocation9 + $0x10] sm:$0xff] %v1367_v33   ;;  %v1382_v45 = vpack.c.bf16 %v1138_v42, %v1137_v37  ;;  %v1182_v48 = vor.u32 %v1321_v39, %v1179_v40  ;;  %v1141_v58 = vld [vmem:[%s2030_s17 + $0x70] sm:$0xff] }
  0x6b   : > { %797 = vmatpush.bf16.msra.mxu3 %v1262_v14  ;;  %1373 = vst [vmem:[#allocation9 + $0x18] sm:$0xff] %v1372_v34   ;;  %v1246_v49 = vor.u32 %v1337_v43, %v1243_v44  ;;  %v1139_v56 = vld [vmem:[%s2030_s17 + $0x60] sm:$0xff]  ;;  %v1140_v57 = vld [vmem:[%s2030_s17 + $0x68] sm:$0xff]  ;;  %v1142_v59 = vld [vmem:[%s2030_s17 + $0x78] sm:$0xff]  ;;  %s2169_s17 = scalar_lea.vmem [#allocation8], %s1127_s9 }
  0x6c   : > { %711 = vmatpush.bf16.msra.mxu0 %v1186_v24  ;;  %1378 = vst [vmem:[#allocation9 + $0x20] sm:$0xff] %v1377_v41   ;;  %v1387_v60 = vpack.c.bf16 %v1140_v57, %v1139_v56  ;;  %v1392_v61 = vpack.c.bf16 %v1142_v59, %v1141_v58 }
  0x6d   : > { %740 = vmatpush.bf16.msra.mxu1 %v1250_v25  ;;  %1383 = vst [vmem:[#allocation9 + $0x28] sm:$0xff] %v1382_v45  }
  0x6e   : > { %769 = vmatpush.bf16.msra.mxu2 %v1190_v32  ;;  %v1145_v50 = vld [vmem:[#allocation9] sm:$0xf]  ;;  %v1313_v51 = vld [vmem:[#allocation9 + $0x4] sm:$0xf]  ;;  %1388 = vst [vmem:[#allocation9 + $0x30] sm:$0xff] %v1387_v60  }
  0x6f   : > { %798 = vmatpush.bf16.msra.mxu3 %v1254_v38  ;;  %v1314_v52 = vld [vmem:[#allocation9 + $0x4] sm:$0xf0]  ;;  %v1147_v53 = vld [vmem:[#allocation9 + $0x8] sm:$0xf0]  ;;  %1393 = vst [vmem:[#allocation9 + $0x38] sm:$0xff] %v1392_v61  }
  0x70   : > { %712 = vmatpush.bf16.msra.mxu0 %v1178_v46  ;;  %v1146_v54 = vor.u32 %v1314_v52, %v1145_v50  ;;  %v1150_v55 = vor.u32 %v1313_v51, %v1147_v53 }
  0x71   : > { %741 = vmatpush.bf16.msra.mxu1 %v1242_v47  ;;  %v1153_v62 = vld [vmem:[#allocation9 + $0x10] sm:$0xf]  ;;  %v1315_v0 = vld [vmem:[#allocation9 + $0x14] sm:$0xf] }
  0x72   : > { %770 = vmatpush.bf16.msra.mxu2 %v1182_v48  ;;  %v1316_v63 = vld [vmem:[#allocation9 + $0x14] sm:$0xf0]  ;;  %v1155_v1 = vld [vmem:[#allocation9 + $0x18] sm:$0xf0] }
  0x73   : > { %799 = vmatpush.bf16.msra.mxu3 %v1246_v49  ;;  %713 = vmatmul.bf16.vlgmr.msra.gmra.mxu0 %v1146_v54  ;;  %v1154_v2 = vor.u32 %v1316_v63, %v1153_v62  ;;  %v1158_v3 = vor.u32 %v1315_v0, %v1155_v1  ;;  %v1161_v4 = vld [vmem:[#allocation9 + $0x20] sm:$0xf]  ;;  %v1317_v6 = vld [vmem:[#allocation9 + $0x24] sm:$0xf] }
  0x74   : > { %742 = vmatmul.bf16.vlgmr.msra.gmra.mxu1 %v1150_v55  ;;  %v1318_v5 = vld [vmem:[#allocation9 + $0x24] sm:$0xf0]  ;;  %v1163_v7 = vld [vmem:[#allocation9 + $0x28] sm:$0xf0] }
  0x75   : > { %771 = vmatmul.bf16.vlgmr.msra.gmra.mxu2 %v1146_v54  ;;  %v1162_v8 = vor.u32 %v1318_v5, %v1161_v4  ;;  %v1166_v9 = vor.u32 %v1317_v6, %v1163_v7  ;;  %v1169_v10 = vld [vmem:[#allocation9 + $0x30] sm:$0xf]  ;;  %v1319_v12 = vld [vmem:[#allocation9 + $0x34] sm:$0xf] }
  0x76   : > { %800 = vmatmul.bf16.vlgmr.msra.gmra.mxu3 %v1150_v55  ;;  %v1320_v11 = vld [vmem:[#allocation9 + $0x34] sm:$0xf0]  ;;  %v1171_v13 = vld [vmem:[#allocation9 + $0x38] sm:$0xf0] }
  0x77   : > { %v1170_v14 = vor.u32 %v1320_v11, %v1169_v10  ;;  %v1174_v15 = vor.u32 %v1319_v12, %v1171_v13 }
  0x83   : > { %718 = vmatmul.bf16.gmra.mxu0 %v1154_v2 }
  0x84   : > { %747 = vmatmul.bf16.gmra.mxu1 %v1158_v3 }
  0x85   : > { %776 = vmatmul.bf16.gmra.mxu2 %v1154_v2 }
  0x86   : > { %805 = vmatmul.bf16.gmra.mxu3 %v1158_v3 }
  0x93   : > { %723 = vmatmul.bf16.gmra.mxu0 %v1162_v8 }
  0x94   : > { %752 = vmatmul.bf16.gmra.mxu1 %v1166_v9 }
  0x95   : > { %781 = vmatmul.bf16.gmra.mxu2 %v1162_v8 }
  0x96   : > { %810 = vmatmul.bf16.gmra.mxu3 %v1166_v9 }
  0xa3   : > { %728 = vmatmul.bf16.gmra.mxu0 %v1170_v14 }
  0xa4   : > { %757 = vmatmul.bf16.gmra.mxu1 %v1174_v15 }
  0xa5   : > { %786 = vmatmul.bf16.gmra.mxu2 %v1170_v14 }
  0xa6   : > { %815 = vmatmul.bf16.gmra.mxu3 %v1174_v15 }
  0xf0   : > { %v714_v16 = vpop.f32.mrf.mxu0 }
  0xf1   : > { %v743_v17 = vpop.f32.mrf.mxu1 }
  0xf2   : > { %v2135_v18 = vadd.f32 %v743_v17, %v714_v16 }
  0xf8   : > { %v772_v19 = vpop.f32.mrf.mxu2  ;;  %v716_v22 = vpop.f32.mrf.mxu0 }
  0xf9   : > { %v801_v20 = vpop.f32.mrf.mxu3  ;;  %v745_v23 = vpop.f32.mrf.mxu1 }
  0xfa   : > { %v2137_v21 = vadd.f32 %v801_v20, %v772_v19  ;;  %v2139_v24 = vadd.f32 %v745_v23, %v716_v22 }
 0x100   : > { %v774_v25 = vpop.f32.mrf.mxu2  ;;  %v719_v28 = vpop.f32.mrf.mxu0 }
 0x101   : > { %v803_v26 = vpop.f32.mrf.mxu3  ;;  %v748_v29 = vpop.f32.mrf.mxu1 }
 0x102   : > { %v2141_v27 = vadd.f32 %v803_v26, %v774_v25  ;;  %v2143_v30 = vadd.f32 %v748_v29, %v719_v28 }
 0x108   : > { %v777_v31 = vpop.f32.mrf.mxu2  ;;  %v721_v34 = vpop.f32.mrf.mxu0 }
 0x109   : > { %v806_v32 = vpop.f32.mrf.mxu3  ;;  %v750_v35 = vpop.f32.mrf.mxu1 }
 0x10a   : > { %v2145_v33 = vadd.f32 %v806_v32, %v777_v31  ;;  %v2147_v36 = vadd.f32 %v750_v35, %v721_v34 }
 0x110   : > { %v779_v37 = vpop.f32.mrf.mxu2  ;;  %v724_v40 = vpop.f32.mrf.mxu0 }
 0x111   : > { %v808_v38 = vpop.f32.mrf.mxu3  ;;  %v753_v41 = vpop.f32.mrf.mxu1 }
 0x112   : > { %v2149_v39 = vadd.f32 %v808_v38, %v779_v37  ;;  %v2151_v42 = vadd.f32 %v753_v41, %v724_v40 }
 0x118   : > { %v782_v43 = vpop.f32.mrf.mxu2  ;;  %v726_v46 = vpop.f32.mrf.mxu0 }
 0x119   : > { %v811_v44 = vpop.f32.mrf.mxu3  ;;  %v755_v47 = vpop.f32.mrf.mxu1 }
 0x11a   : > { %v2153_v45 = vadd.f32 %v811_v44, %v782_v43  ;;  %v2155_v48 = vadd.f32 %v755_v47, %v726_v46 }
 0x120   : > { %v784_v49 = vpop.f32.mrf.mxu2  ;;  %v729_v52 = vpop.f32.mrf.mxu0 }
 0x121   : > { %v813_v50 = vpop.f32.mrf.mxu3  ;;  %v758_v53 = vpop.f32.mrf.mxu1 }
 0x122   : > { %v2157_v51 = vadd.f32 %v813_v50, %v784_v49  ;;  %v2159_v54 = vadd.f32 %v758_v53, %v729_v52 }
 0x128   : > { %v787_v55 = vpop.f32.mrf.mxu2  ;;  %v731_v58 = vpop.f32.mrf.mxu0 }
 0x129   : > { %v816_v56 = vpop.f32.mrf.mxu3  ;;  %v760_v59 = vpop.f32.mrf.mxu1 }
 0x12a   : > { %v2161_v57 = vadd.f32 %v816_v56, %v787_v55  ;;  %v2163_v60 = vadd.f32 %v760_v59, %v731_v58 }
 0x12e   : > { %824 = sbr.rel (%p1303_p7) target bundleno = 323 (0x143), region = 48 }
 0x130   : > { %v789_v61 = vpop.f32.mrf.mxu2 }
 0x131   : > { %v818_v62 = vpop.f32.mrf.mxu3 }
 0x132   : > { %v2165_v63 = vadd.f32 %v818_v62, %v789_v61 }
 0x133   : > { %825 = vst [vmem:[%s2169_s17] sm:$0xff] %v2135_v18 }
 0x134   : > { %826 = vst [vmem:[%s2169_s17 + $0x8] sm:$0xff] %v2137_v21 }
 0x135   : > { %827 = vst [vmem:[%s2169_s17 + $0x10] sm:$0xff] %v2139_v24 }
 0x136   : > { %828 = vst [vmem:[%s2169_s17 + $0x18] sm:$0xff] %v2141_v27 }
 0x137   : > { %829 = vst [vmem:[%s2169_s17 + $0x20] sm:$0xff] %v2143_v30 }
 0x138   : > { %830 = vst [vmem:[%s2169_s17 + $0x28] sm:$0xff] %v2145_v33 }
 0x139   : > { %831 = vst [vmem:[%s2169_s17 + $0x30] sm:$0xff] %v2147_v36 }
 0x13a   : > { %832 = vst [vmem:[%s2169_s17 + $0x38] sm:$0xff] %v2149_v39 }
 0x13b   : > { %833 = vst [vmem:[%s2169_s17 + $0x40] sm:$0xff] %v2151_v42 }
 0x13c   : > { %834 = vst [vmem:[%s2169_s17 + $0x48] sm:$0xff] %v2153_v45 }
 0x13d   : > { %835 = vst [vmem:[%s2169_s17 + $0x50] sm:$0xff] %v2155_v48 }
 0x13e   : > { %836 = vst [vmem:[%s2169_s17 + $0x58] sm:$0xff] %v2157_v51 }
 0x13f   : > { %837 = vst [vmem:[%s2169_s17 + $0x60] sm:$0xff] %v2159_v54 }
 0x140   : > { %838 = vst [vmem:[%s2169_s17 + $0x68] sm:$0xff] %v2161_v57 }
 0x141   : > { %839 = vst [vmem:[%s2169_s17 + $0x70] sm:$0xff] %v2163_v60 }
 0x142   : > { %840 = vst [vmem:[%s2169_s17 + $0x78] sm:$0xff] %v2165_v63 }
 0x143 PF: > { %p1304_p11 = scmp.le.s32.totalorder %s1766_s21, 0 }
 0x145   : > { %844 = sbr.rel (%p1304_p11) target bundleno = 349 (0x15d), region = 52 }
 0x14a   : > { %v845_v0 = vld [vmem:[%s2169_s17] sm:$0xff]  ;;  %v846_v1 = vld [vmem:[%s2169_s17 + $0x8] sm:$0xff]  ;;  %v847_v2 = vld [vmem:[%s2169_s17 + $0x10] sm:$0xff] }
 0x14b   : > { %v848_v3 = vld [vmem:[%s2169_s17 + $0x18] sm:$0xff]  ;;  %v849_v4 = vld [vmem:[%s2169_s17 + $0x20] sm:$0xff]  ;;  %v850_v5 = vld [vmem:[%s2169_s17 + $0x28] sm:$0xff]  ;;  %v861_v6 = vadd.f32 %v845_v0, %v2135_v18  ;;  %v862_v7 = vadd.f32 %v846_v1, %v2137_v21  ;;  %v863_v8 = vadd.f32 %v847_v2, %v2139_v24 }
 0x14c   : > { %v851_v9 = vld [vmem:[%s2169_s17 + $0x30] sm:$0xff]  ;;  %v864_v10 = vadd.f32 %v848_v3, %v2141_v27  ;;  %v852_v11 = vld [vmem:[%s2169_s17 + $0x38] sm:$0xff]  ;;  %v865_v12 = vadd.f32 %v849_v4, %v2143_v30  ;;  %v853_v13 = vld [vmem:[%s2169_s17 + $0x40] sm:$0xff]  ;;  %v866_v14 = vadd.f32 %v850_v5, %v2145_v33 }
 0x14d   : > { %877 = vst [vmem:[%s2169_s17] sm:$0xff] %v861_v6  ;;  %v854_v15 = vld [vmem:[%s2169_s17 + $0x48] sm:$0xff]  ;;  %v867_v16 = vadd.f32 %v851_v9, %v2147_v36  ;;  %v855_v17 = vld [vmem:[%s2169_s17 + $0x50] sm:$0xff]  ;;  %v868_v18 = vadd.f32 %v852_v11, %v2149_v39  ;;  %v856_v19 = vld [vmem:[%s2169_s17 + $0x58] sm:$0xff]  ;;  %v869_v20 = vadd.f32 %v853_v13, %v2151_v42 }
 0x14e   : > { %878 = vst [vmem:[%s2169_s17 + $0x8] sm:$0xff] %v862_v7  ;;  %v857_v21 = vld [vmem:[%s2169_s17 + $0x60] sm:$0xff]  ;;  %v870_v22 = vadd.f32 %v854_v15, %v2153_v45  ;;  %v858_v23 = vld [vmem:[%s2169_s17 + $0x68] sm:$0xff]  ;;  %v871_v24 = vadd.f32 %v855_v17, %v2155_v48  ;;  %v859_v25 = vld [vmem:[%s2169_s17 + $0x70] sm:$0xff]  ;;  %v872_v26 = vadd.f32 %v856_v19, %v2157_v51 }
 0x14f   : > { %879 = vst [vmem:[%s2169_s17 + $0x10] sm:$0xff] %v863_v8  ;;  %v860_v27 = vld [vmem:[%s2169_s17 + $0x78] sm:$0xff]  ;;  %v873_v28 = vadd.f32 %v857_v21, %v2159_v54  ;;  %v874_v29 = vadd.f32 %v858_v23, %v2161_v57  ;;  %v875_v30 = vadd.f32 %v859_v25, %v2163_v60 }
 0x150   : > { %880 = vst [vmem:[%s2169_s17 + $0x18] sm:$0xff] %v864_v10  ;;  %v876_v31 = vadd.f32 %v860_v27, %v2165_v63 }
 0x151   : > { %881 = vst [vmem:[%s2169_s17 + $0x20] sm:$0xff] %v865_v12 }
 0x152   : > { %882 = vst [vmem:[%s2169_s17 + $0x28] sm:$0xff] %v866_v14 }
 0x153   : > { %883 = vst [vmem:[%s2169_s17 + $0x30] sm:$0xff] %v867_v16 }
 0x154   : > { %884 = vst [vmem:[%s2169_s17 + $0x38] sm:$0xff] %v868_v18 }
 0x155   : > { %885 = vst [vmem:[%s2169_s17 + $0x40] sm:$0xff] %v869_v20 }
 0x156   : > { %886 = vst [vmem:[%s2169_s17 + $0x48] sm:$0xff] %v870_v22 }
 0x157   : > { %887 = vst [vmem:[%s2169_s17 + $0x50] sm:$0xff] %v871_v24 }
 0x158   : > { %888 = vst [vmem:[%s2169_s17 + $0x58] sm:$0xff] %v872_v26 }
 0x159   : > { %889 = vst [vmem:[%s2169_s17 + $0x60] sm:$0xff] %v873_v28 }
 0x15a   : > { %890 = vst [vmem:[%s2169_s17 + $0x68] sm:$0xff] %v874_v29 }
 0x15b   : > { %891 = vst [vmem:[%s2169_s17 + $0x70] sm:$0xff] %v875_v30 }
 0x15c   : > { %892 = vst [vmem:[%s2169_s17 + $0x78] sm:$0xff] %v876_v31 }
 0x15d PF: > { %p1305_p3 = scmp.ne.s32.totalorder %s1766_s21, 2 }
 0x15f   : > { %896 = sbr.rel (%p1305_p3) target bundleno = 378 (0x17a), region = 56 }
 0x164   : > { %v897_v32 = vld [vmem:[%s2169_s17] sm:$0xff]  ;;  %v898_v33 = vld [vmem:[%s2169_s17 + $0x8] sm:$0xff]  ;;  %v899_v34 = vld [vmem:[%s2169_s17 + $0x10] sm:$0xff] }
 0x165   : > { %v913_v35 = vld [vmem:[%s2048_s28] sm:$0x3]  ;;  %v901_v39 = vld [vmem:[%s2169_s17 + $0x20] sm:$0xff]  ;;  %v902_v40 = vld [vmem:[%s2169_s17 + $0x28] sm:$0xff] }
 0x166   : > { %v900_v36 = vld [vmem:[%s2169_s17 + $0x18] sm:$0xff]  ;;  %v915_v37 = vperm.slane %v913_v35, 0  ;;  %v916_v38 = vperm.slane %v913_v35, 1  ;;  %v903_v44 = vld [vmem:[%s2169_s17 + $0x30] sm:$0xff]  ;;  %v905_v48 = vld [vmem:[%s2169_s17 + $0x40] sm:$0xff] }
 0x167   : > { %v904_v46 = vld [vmem:[%s2169_s17 + $0x38] sm:$0xff]  ;;  %v906_v50 = vld [vmem:[%s2169_s17 + $0x48] sm:$0xff]  ;;  %v907_v52 = vld [vmem:[%s2169_s17 + $0x50] sm:$0xff] }
 0x168   : > { %v919_v41 = vadd.f32 %v915_v37, %v897_v32  ;;  %v920_v42 = vadd.f32 %v916_v38, %v898_v33  ;;  %v921_v43 = vadd.f32 %v915_v37, %v899_v34  ;;  %v922_v45 = vadd.f32 %v916_v38, %v900_v36  ;;  %v908_v54 = vld [vmem:[%s2169_s17 + $0x58] sm:$0xff]  ;;  %v909_v56 = vld [vmem:[%s2169_s17 + $0x60] sm:$0xff]  ;;  %v910_v58 = vld [vmem:[%s2169_s17 + $0x68] sm:$0xff] }
 0x169   : > { %v923_v47 = vadd.f32 %v915_v37, %v901_v39  ;;  %v924_v49 = vadd.f32 %v916_v38, %v902_v40  ;;  %v925_v51 = vadd.f32 %v915_v37, %v903_v44  ;;  %v926_v53 = vadd.f32 %v916_v38, %v904_v46  ;;  %v911_v60 = vld [vmem:[%s2169_s17 + $0x70] sm:$0xff]  ;;  %v912_v62 = vld [vmem:[%s2169_s17 + $0x78] sm:$0xff] }
 0x16a   : > { %935 = vst [vmem:[%s2169_s17] sm:$0xff] %v919_v41  ;;  %v927_v55 = vadd.f32 %v915_v37, %v905_v48  ;;  %v928_v57 = vadd.f32 %v916_v38, %v906_v50  ;;  %v929_v59 = vadd.f32 %v915_v37, %v907_v52  ;;  %v930_v61 = vadd.f32 %v916_v38, %v908_v54 }
 0x16b   : > { %936 = vst [vmem:[%s2169_s17 + $0x8] sm:$0xff] %v920_v42  ;;  %v931_v63 = vadd.f32 %v915_v37, %v909_v56  ;;  %v932_v0 = vadd.f32 %v916_v38, %v910_v58  ;;  %v933_v1 = vadd.f32 %v915_v37, %v911_v60  ;;  %v934_v2 = vadd.f32 %v916_v38, %v912_v62 }
 0x16c   : > { %937 = vst [vmem:[%s2169_s17 + $0x10] sm:$0xff] %v921_v43 }
 0x16d   : > { %938 = vst [vmem:[%s2169_s17 + $0x18] sm:$0xff] %v922_v45 }
 0x16e   : > { %939 = vst [vmem:[%s2169_s17 + $0x20] sm:$0xff] %v923_v47 }
 0x16f   : > { %940 = vst [vmem:[%s2169_s17 + $0x28] sm:$0xff] %v924_v49 }
 0x170   : > { %941 = vst [vmem:[%s2169_s17 + $0x30] sm:$0xff] %v925_v51 }
 0x171   : > { %942 = vst [vmem:[%s2169_s17 + $0x38] sm:$0xff] %v926_v53 }
 0x172   : > { %943 = vst [vmem:[%s2169_s17 + $0x40] sm:$0xff] %v927_v55 }
 0x173   : > { %944 = vst [vmem:[%s2169_s17 + $0x48] sm:$0xff] %v928_v57 }
 0x174   : > { %945 = vst [vmem:[%s2169_s17 + $0x50] sm:$0xff] %v929_v59 }
 0x175   : > { %946 = vst [vmem:[%s2169_s17 + $0x58] sm:$0xff] %v930_v61 }
 0x176   : > { %947 = vst [vmem:[%s2169_s17 + $0x60] sm:$0xff] %v931_v63 }
 0x177   : > { %948 = vst [vmem:[%s2169_s17 + $0x68] sm:$0xff] %v932_v0 }
 0x178   : > { %949 = vst [vmem:[%s2169_s17 + $0x70] sm:$0xff] %v933_v1 }
 0x179   : > { %950 = vst [vmem:[%s2169_s17 + $0x78] sm:$0xff] %v934_v2 }
 0x17a PF: > { %s1353_s21 = sshll.u32 %s1770_s22, 4  ;;  %s2392_s5 = sld [smem:[#allocation24_spill]] }
 0x17b   : > { %s967_s29 = sshll.u32 %s2169_s17, 4  ;;  %s952_s10 = scalar_lea.sflag [#allocation4], %s2045_s24  ;;  %s968_s29 = int_to_ptr.vmem [resolvable:$true] %s967_s29 }
 0x180   : > { %s966_s15 = scalar_lea.hbm %s2392_s5, %s1353_s21  ;;  %s1648_s22 = scalar_lea.hbm %s2392_s5, 256 }
 0x181   : > { %s969_s26 = sshll.u32 %s966_s15, 4  ;;  %s970_s26 = int_to_ptr.hbm [resolvable:$true] %s969_s26 }
 0x182   : > { %s1642_s3 = sshra.s32 %s970_s26, 4  ;;  %s1643_s3 = int_to_ptr.hbm [resolvable:$true] %s1642_s3 }
 0x183   : > { %s1644_s6 = scalar_lea.hbm %s1643_s3, 128  ;;  %p1649_p12 = scmp.lt.s32.totalorder %s1643_s3, %s2392_s5 }
 0x184   : > { %p1645_p5 = scmp.ne.s32.totalorder %s1643_s3, %s1644_s6  ;;  %p1650_p6 = scmp.lt.s32.totalorder %s1648_s22, %s1644_s6 }
 0x186   : > { %p1646_p8 = pnand %p1645_p5, %p2009_p4  ;;  %p1651_p13 = por %p1650_p6, %p1649_p12 }
 0x188   : > { %p1647_p10 = pneg %p1646_p8 }
 0x18a   : > { %p1652_p0 = pnand %p1651_p13, %p1647_p10 }
 0x18c   : > { %1655 = shalt.err (!%p1652_p0)
}
 0x18d   : > { %s1789_s8 = smov 256   ;;  %s1790_s24 = smov 512  }
 0x18e   : > { %s1791_s30 = smov 16  }
 0x18f   : > { %1400 = dma.vmem_to_hbm [thread:$0]  (%p2009_p4), %s968_s29, 2048, %s970_s26, %s952_s10, %s1789_s8, %s1790_s24, %s1791_s30  }
 0x190 PF: > { %p1417_p2 = scmp.ge.s32.totalorder %s1782_s25, 2  ;;  %s984_s28 = sand.u32 1, %s1730_s12  }
 0x191   : > { %s985_s9 = scalar_lea.sflag [#allocation4], %s984_s28 }
 0x192   : > { %p1413_p1 = pnand %p1417_p2, %p2013_p9 }
 0x194   : > { %p1414_p7 = pneg %p1413_p1 }
 0x196   : > { %1725 = dma.done.wait (%p1414_p7), %s985_s9, 2048  }
 0x197   : > { %1727 = vsyncadd (%p1414_p7), %s985_s9, 4294965248  ;;  %s22_s25 = sadd.s32 1, %s1782_s25   ;;  %s2394_s4 = sld [smem:[#allocation14_spill]] }
 0x198   : > { %p2308_p11 = scmp.ge.s32.totalorder %s22_s25, 8   ;;  %s2395_s21 = sld [smem:[#allocation21_spill]] }
 0x199   : > { %s2396_s0 = sld [smem:[#allocation15_spill]]  ;;  %s2403_s12 = smov %s1734_s13 }
 0x19a   : > { %s2397_s20 = sld [smem:[#allocation19_spill]]  ;;  %s2404_s13 = smov %s1738_s14 }
 0x19b   : > { %s2398_s11 = sld [smem:[#allocation16_spill]]  ;;  %s2405_s14 = smov %s1986_s18 }
 0x19c   : > { %s2399_s22 = sld [smem:[#allocation17_spill]]  ;;  %s2406_s15 = smov %s1746_s16 }
 0x19d   : > { %s2400_s23 = sld [smem:[#allocation18_spill]]  ;;  %s2407_s16 = smov %s2394_s4 }
 0x19e   : > { %s2401_s24 = sld [smem:[#allocation20_spill]]  ;;  %s2408_s17 = smov %s2395_s21 }
 0x19f   : > { %s2409_s18 = smov %s1758_s19  ;;  %s2410_s19 = smov %s2396_s0 }
 0x1a0   :  { %21 = sbr.rel (!%p2308_p11) target bundleno = 16 (0x10), region = 143 }
 0x1a1   : > { %s2411_s21 = smov %s2398_s11 }
 0x1a5   :  { %991 = vsyncpa [#allocation3], 1 }
 0x1a6   :  { %993 = vsyncpa [#allocation3 + $0x1], 1 }
 0x1a7   :  { %994 = vsyncpa [#allocation6], 1 }
 0x1a8   :  { %996 = vsyncpa [#allocation6 + $0x1], 1 }
 0x1a9   :  { %997 = vsyncpa [#allocation4], 1 }
 0x1aa   :  { %999 = vsyncpa [#allocation4 + $0x1], 1 }

</bundles_post_ra>
